<compile_context>
chip_gen: v7x
topology: tpu7x:2x2x1
jax: 0.10.0
libtpu: 0.0.40
codegen_flags: <defaults>
</compile_context>

<pallas_src>
import functools

import jax
import jax.numpy as jnp
from jax.experimental import pallas as pl
from jax.experimental.pallas import tpu as pltpu


def _round_up(n: int, m: int) -> int:
    return ((n + m - 1) // m) * m


def mlp_kernel(x_ref, w1_ref, b1_ref, w2_ref, b2_ref, o_ref):
    # Cast activations to the weight dtype in-kernel (no wrapper-side HBM copy).
    x = x_ref[...].astype(w1_ref.dtype)
    # fc1: [TB, I] @ [I, H] -> f32 accumulate; bias + ReLU in f32.
    h = jnp.dot(x, w1_ref[...], preferred_element_type=jnp.float32)
    h = jnp.maximum(h + b1_ref[...], 0.0)
    # fc2: [TB, H] @ [H, O] -> f32 accumulate; bias in f32.
    y = jnp.dot(h.astype(w2_ref.dtype), w2_ref[...],
                preferred_element_type=jnp.float32)
    y = y + b2_ref[...]
    # Sigmoid via a single EUP push (exact, no approx reciprocal).
    o_ref[...] = (0.5 * (jnp.tanh(0.5 * y) + 1.0)).astype(o_ref.dtype)


@functools.partial(jax.jit, static_argnames=("block_b", "out_dtype"))
def multilabel_network(x, w1, b1, w2, b2, *, block_b=1024, out_dtype=jnp.float32):
    """Forward pass of MultilabelNetwork.

    x:  [B, I]   w1: [I, H]   b1: [1, H]   w2: [H, O]   b2: [1, O]  ->  [B, O]
    (weights stored pre-transposed relative to torch.nn.Linear, so y = x @ W + b)
    Pass w1/w2 already cast to bf16 (hoisted out of the per-call path) to feed the
    MXU in bf16; biases stay f32.
    """
    B, I = x.shape
    H = w1.shape[1]
    O = w2.shape[1]

    # Batch tile: a single full-dim tile when B fits (full-dim blocks are always
    # legal, no 8-row rounding needed); otherwise a multiple-of-8 tile. The grid
    # runs on the unpadded batch; Pallas masks the partial tail block and rows are
    # independent, so no batch padding / slicing is needed.
    if B <= block_b:
        TB = B
    else:
        TB = _round_up(min(block_b, B), 8)
    grid = (pl.cdiv(B, TB),)
    # NOTE(v7x): with 2 TCs per chip, prefer >= 2 grid steps for large B (halve TB
    # rather than running grid=(1,)). For the module's tiny B this is moot.

    # Rough VMEM footprint (double-buffered x/out tiles + resident weights/biases +
    # f32 intermediates). Only raise the scoped limit when actually needed; cap at
    # 64 MiB so the request is safe on v7x as well as v5e/v6e.
    est = (
        2 * TB * I * x.dtype.itemsize
        + 2 * TB * O * jnp.dtype(out_dtype).itemsize
        + 2 * (I * H * w1.dtype.itemsize + H * O * w2.dtype.itemsize)
        + 2 * (H + O) * 4
        + 2 * TB * max(H, O) * 4
    )
    vmem_limit = None
    if est > (12 << 20):
        vmem_limit = int(min(max(2 * est, 32 << 20), 64 << 20))
    # TODO(synk): for production-size layers where 2*(I*H + H*O) bf16 bytes
    # approaches v7x's 64 MiB VMEM, single-buffer the invariant weight specs
    # (pipeline_mode=pl.Buffered(1)) and add an "arbitrary" K-reduction grid axis
    # over H with a (TB, O) f32 VMEM accumulator instead of whole-weight residency;
    # round TB (and padded dims, if padding returns) to 256 for the v6e/v7x MXU.

    return pl.pallas_call(
        mlp_kernel,
        out_shape=jax.ShapeDtypeStruct((B, O), out_dtype),
        grid_spec=pl.GridSpec(
            grid=grid,
            in_specs=[
                pl.BlockSpec((TB, I), lambda i: (i, 0)),   # x: streamed per batch tile
                pl.BlockSpec((I, H), lambda i: (0, 0)),    # w1: VMEM-resident
                pl.BlockSpec((1, H), lambda i: (0, 0)),    # b1: VMEM-resident
                pl.BlockSpec((H, O), lambda i: (0, 0)),    # w2: VMEM-resident
                pl.BlockSpec((1, O), lambda i: (0, 0)),    # b2: VMEM-resident
            ],
            out_specs=pl.BlockSpec((TB, O), lambda i: (i, 0)),
        ),
        compiler_params=pltpu.CompilerParams(
            dimension_semantics=("parallel",),             # 2-TC sharding on v7x
            vmem_limit_bytes=vmem_limit,
        ),
    )(x, w1, b1, w2, b2)


if __name__ == "__main__":
    # Small shapes consistent with the module: input_size=16, hidden_size=32, output_size=4.
    B, INPUT, HIDDEN, OUTPUT = 8, 16, 32, 4

    key = jax.random.PRNGKey(0)
    kx, kw1, kb1, kw2, kb2 = jax.random.split(key, 5)

    x = jax.random.normal(kx, (B, INPUT), dtype=jnp.float32)
    # Deterministic parameter init (PyTorch nn.Linear-like uniform bounds).
    bound1 = 1.0 / (INPUT ** 0.5)
    w1 = jax.random.uniform(kw1, (INPUT, HIDDEN), jnp.float32, -bound1, bound1)
    b1 = jax.random.uniform(kb1, (1, HIDDEN), jnp.float32, -bound1, bound1)
    bound2 = 1.0 / (HIDDEN ** 0.5)
    w2 = jax.random.uniform(kw2, (HIDDEN, OUTPUT), jnp.float32, -bound2, bound2)
    b2 = jax.random.uniform(kb2, (1, OUTPUT), jnp.float32, -bound2, bound2)

    # Hoist the weight cast out of the per-call path (cast once, reuse every call).
    w1_bf16 = w1.astype(jnp.bfloat16)
    w2_bf16 = w2.astype(jnp.bfloat16)

    out = multilabel_network(x, w1_bf16, b1, w2_bf16, b2)
    out = jax.block_until_ready(out)

    # Reference in plain JAX (same semantics as the PyTorch forward), f32 throughout.
    ref = jax.nn.sigmoid(jnp.maximum(x @ w1 + b1, 0.0) @ w2 + b2)
    assert out.shape == (B, OUTPUT)
    # Loose tolerance: kernel uses bf16 MXU operands (f32 accumulation).
    assert jnp.allclose(out, ref, atol=2e-2, rtol=2e-2), (
        f"max abs err {jnp.max(jnp.abs(out - ref))}")

    print("KERNEL_OK")
</pallas_src>

<mosaic_0001>
module attributes {stable_mosaic.version = 11 : i64} {
  func.func @mlp_kernel(%arg0: i32, %arg1: memref<8x16xf32, #tpu.memory_space<vmem>>, %arg2: memref<16x32xbf16, #tpu.memory_space<vmem>>, %arg3: memref<1x32xf32, #tpu.memory_space<vmem>>, %arg4: memref<32x4xbf16, #tpu.memory_space<vmem>>, %arg5: memref<1x4xf32, #tpu.memory_space<vmem>>, %arg6: memref<8x4xf32, #tpu.memory_space<vmem>>) attributes {dimension_semantics = [#tpu.dimension_semantics<parallel>], iteration_bounds = array<i64: 1>, scalar_prefetch = 0 : i64, scratch_operands = 0 : i64, tpu.core_type = #tpu.core_type<tc>, window_params = [{transform_indices = @transform_0, window_bounds = array<i64: 8, 16>}, {pipeline_mode = #tpu.pipeline_mode<synchronous>, transform_indices = @transform_1, window_bounds = array<i64: 16, 32>}, {pipeline_mode = #tpu.pipeline_mode<synchronous>, transform_indices = @transform_2, window_bounds = array<i64: 1, 32>}, {pipeline_mode = #tpu.pipeline_mode<synchronous>, transform_indices = @transform_3, window_bounds = array<i64: 32, 4>}, {pipeline_mode = #tpu.pipeline_mode<synchronous>, transform_indices = @transform_4, window_bounds = array<i64: 1, 4>}, {transform_indices = @transform_5, window_bounds = array<i64: 8, 4>}]} {
    %c0 = arith.constant 0 : index
    %c0_0 = arith.constant 0 : index
    %0 = vector.load %arg1[%c0, %c0_0] : memref<8x16xf32, #tpu.memory_space<vmem>>, vector<8x16xf32>
    %1 = arith.truncf %0 : vector<8x16xf32> to vector<8x16xbf16>
    %c0_1 = arith.constant 0 : index
    %c0_2 = arith.constant 0 : index
    %2 = vector.load %arg2[%c0_1, %c0_2] : memref<16x32xbf16, #tpu.memory_space<vmem>>, vector<16x32xbf16>
    %cst = arith.constant dense<0.000000e+00> : vector<8x32xf32>
    %3 = tpu.matmul %1, %2, %cst {dimension_numbers = #tpu.dot_dimension_numbers<[1], [0], [0], [1], [0, 0, 1, 1], [], []>} : vector<8x16xbf16>, vector<16x32xbf16>, vector<8x32xf32> -> vector<8x32xf32>
    %c0_3 = arith.constant 0 : index
    %c0_4 = arith.constant 0 : index
    %4 = vector.load %arg3[%c0_3, %c0_4] : memref<1x32xf32, #tpu.memory_space<vmem>>, vector<1x32xf32>
    %5 = vector.broadcast %4 : vector<1x32xf32> to vector<8x32xf32>
    %6 = arith.addf %3, %5 : vector<8x32xf32>
    %cst_5 = arith.constant 0.000000e+00 : f32
    %7 = vector.broadcast %cst_5 : f32 to vector<8x32xf32>
    %8 = arith.maximumf %6, %7 : vector<8x32xf32>
    %9 = arith.truncf %8 : vector<8x32xf32> to vector<8x32xbf16>
    %c0_6 = arith.constant 0 : index
    %c0_7 = arith.constant 0 : index
    %10 = vector.load %arg4[%c0_6, %c0_7] : memref<32x4xbf16, #tpu.memory_space<vmem>>, vector<32x4xbf16>
    %cst_8 = arith.constant dense<0.000000e+00> : vector<8x4xf32>
    %11 = tpu.matmul %9, %10, %cst_8 {dimension_numbers = #tpu.dot_dimension_numbers<[1], [0], [0], [1], [0, 0, 1, 1], [], []>} : vector<8x32xbf16>, vector<32x4xbf16>, vector<8x4xf32> -> vector<8x4xf32>
    %c0_9 = arith.constant 0 : index
    %c0_10 = arith.constant 0 : index
    %12 = vector.load %arg5[%c0_9, %c0_10] : memref<1x4xf32, #tpu.memory_space<vmem>>, vector<1x4xf32>
    %13 = vector.broadcast %12 : vector<1x4xf32> to vector<8x4xf32>
    %14 = arith.addf %11, %13 : vector<8x4xf32>
    %cst_11 = arith.constant 5.000000e-01 : f32
    %15 = vector.broadcast %cst_11 : f32 to vector<8x4xf32>
    %16 = arith.mulf %15, %14 : vector<8x4xf32>
    %17 = math.tanh %16 : vector<8x4xf32>
    %cst_12 = arith.constant 1.000000e+00 : f32
    %18 = vector.broadcast %cst_12 : f32 to vector<8x4xf32>
    %19 = arith.addf %17, %18 : vector<8x4xf32>
    %cst_13 = arith.constant 5.000000e-01 : f32
    %20 = vector.broadcast %cst_13 : f32 to vector<8x4xf32>
    %21 = arith.mulf %20, %19 : vector<8x4xf32>
    %c0_14 = arith.constant 0 : index
    %c0_15 = arith.constant 0 : index
    %22 = vector.load %arg6[%c0_14, %c0_15] : memref<8x4xf32, #tpu.memory_space<vmem>>, vector<8x4xf32>
    tpu.vector_store %arg6[%c0_14, %c0_15], %21 {strides = array<i32>} : memref<8x4xf32, #tpu.memory_space<vmem>>, vector<8x4xf32>,
    return
  }
  func.func @transform_0(%arg0: i32) -> (i32, i32) {
    %c0_i32 = arith.constant 0 : i32
    %c0_i32_0 = arith.constant 0 : i32
    return %arg0, %c0_i32 : i32, i32
  }
  func.func @transform_1(%arg0: i32) -> (i32, i32) {
    %c0_i32 = arith.constant 0 : i32
    %c0_i32_0 = arith.constant 0 : i32
    %c0_i32_1 = arith.constant 0 : i32
    return %c0_i32, %c0_i32_0 : i32, i32
  }
  func.func @transform_2(%arg0: i32) -> (i32, i32) {
    %c0_i32 = arith.constant 0 : i32
    %c0_i32_0 = arith.constant 0 : i32
    %c0_i32_1 = arith.constant 0 : i32
    return %c0_i32, %c0_i32_0 : i32, i32
  }
  func.func @transform_3(%arg0: i32) -> (i32, i32) {
    %c0_i32 = arith.constant 0 : i32
    %c0_i32_0 = arith.constant 0 : i32
    %c0_i32_1 = arith.constant 0 : i32
    return %c0_i32, %c0_i32_0 : i32, i32
  }
  func.func @transform_4(%arg0: i32) -> (i32, i32) {
    %c0_i32 = arith.constant 0 : i32
    %c0_i32_0 = arith.constant 0 : i32
    %c0_i32_1 = arith.constant 0 : i32
    return %c0_i32, %c0_i32_0 : i32, i32
  }
  func.func @transform_5(%arg0: i32) -> (i32, i32) {
    %c0_i32 = arith.constant 0 : i32
    %c0_i32_0 = arith.constant 0 : i32
    return %arg0, %c0_i32 : i32, i32
  }
}

</mosaic_0001>

<bundles_post_ra>
// kernel: multilabel_network.1
= control target key start
LH: loop header
LB: loop body
LE: loop exit
PB: predicated region body
PF: predicated region fallthrough
CT: control target
= control target key end

     0   :  { %v194_v0 = vmov 0.0   ;;  %vm195_vm0 = vmmov 0   ;;  %vm38_vm1 = vcmask 130048   ;;  %vm107_vm2 = vcmask 261120   ;;  %s247_s1 = inlined_call_operand.vmem [shape: bf16[16,32], index: 1, kind: input, shape index: {}]   ;;  %s248_s0 = inlined_call_operand.vmem [shape: f32[8,16], index: 0, kind: input, shape index: {}]   ;;  %s249_s3 = inlined_call_operand.vmem [shape: bf16[32,4], index: 3, kind: input, shape index: {}]   ;;  %s250_s2 = inlined_call_operand.vmem [shape: f32[1,32], index: 2, kind: input, shape index: {}]   ;;  %s251_s4 = inlined_call_operand.vmem [shape: f32[1,4], index: 4, kind: input, shape index: {}]   ;;  %s252_s5 = inlined_call_operand.vmem [shape: f32[8,4], index: 5, kind: output, shape index: {}]  }
   0x1   :  { %173 = vmatprep.subr.bf16.mxu0 %v194_v0  ;;  %v189_v1 = vld [vmem:[%s247_s1] sm:$0xff]   ;;  %175 = vmatprep.mubr.msk.bf16.mxu0 %vm195_vm0, %v194_v0  ;;  %v191_v5 = vld [vmem:[%s249_s3 + $0x8] sm:$0xff]   ;;  %vm155_vm3 = vcmask 31744  }
   0x2   :  { %v21_v2 = vld [vmem:[%s248_s0] sm:$0xff]  ;;  %179 = vmatprep.subr.bf16.mxu1 %v194_v0  ;;  %183 = vmatprep.mubr.msk.bf16.mxu1 %vm195_vm0, %v194_v0 }
   0x3   :  { %174 = vmatpush3.bf16.msra.mxu0 %v189_v1  ;;  %v22_v3 = vpack.c.bf16 %v21_v2, %v21_v2  ;;  %v190_v4 = vld [vmem:[%s249_s3] sm:$0xff]  }
   0x4   :  { %180 = vmatpush3.bf16.msra.mxu1 %v190_v4  ;;  %v161_v6 = vld [vmem:[%s250_s2] ss:$0 sm:$0xff] }
   0x5   :  { %181 = vmatprep.subr.bf16.mxu1 %v194_v0  ;;  %v164_v14 = vld [vmem:[%s251_s4] ss:$0 sm:$0xff] }
   0x6   :  { %176 = vmatmul.mubr.msk.bf16.vlgmr.msra.gmra.mrb[0].mxu0 %vm38_vm1, %v22_v3 }
   0x8   :  { %182 = vmatpush3.bf16.msra.mxu1 %v191_v5 }
  0xd9   :  { %v76_v7 = vpop.f32.mrb[0].mxu0 }
  0xda   :  { %v77_v8 = vadd.f32 %v161_v6, %v76_v7  ;;  %v177_v9 = vpop.f32.mrb[1].mxu0 }
  0xdb   :  { %v79_v10 = vpop.f32.mrb[2].mxu0 }
  0xdc   :  { %v82_v11 = vmax.f32 %v77_v8, 0.0  ;;  %v178_v12 = vpop.f32.mrb[3].mxu0 }
  0xde   :  { %v83_v13 = vpack.c.bf16 %v82_v11, %v82_v11 }
  0xe0   :  { %184 = vmatmul.mubr.msk.bf16.vlgmr.msra.gmra.mrb[0].mxu1 %vm107_vm2, %v83_v13 }
 0x1b3   :  { %v145_v15 = vpop.f32.mrb[0].mxu1 }
 0x1b4   :  { %v146_v16 = vadd.f32 %v164_v14, %v145_v15  ;;  %v185_v17 = vpop.f32.mrb[1].mxu1 }
 0x1b5   :  { %v148_v18 = vpop.f32.mrb[2].mxu1 }
 0x1b6   :  { %v151_v19 = vmul.f32 0.5, %v146_v16  ;;  %v186_v20 = vpop.f32.mrb[3].mxu1 }
 0x1b8   :  { %192 = vtanh.f32 %v151_v19 }
 0x1c2   :  { %v193_v21 = vpop.eup %192 }
 0x1c3   :  { %v153_v22 = vadd.f32 1.0, %v193_v21 }
 0x1c5   :  { %v154_v23 = vmul.f32 0.5, %v153_v22 }
 0x1c7   :  { %156 = vst.msk [vmem:[%s252_s5] sm:$0xff] %vm155_vm3, %v154_v23 }

</bundles_post_ra>
